<compile_context>
chip_gen: v7x
topology: tpu7x:2x2x1
jax: 0.10.0
libtpu: 0.0.40
codegen_flags: <defaults>
</compile_context>

<pallas_src>
import functools

import jax
import jax.numpy as jnp
from jax import lax
from jax.experimental import pallas as pl
from jax.experimental.pallas import tpu as pltpu

BN_EPS = 1e-5


def _round_up(x, m):
    return (x + m - 1) // m * m


# --------------------------------------------------------------------------- #
# Fused path: whole activation resident in VMEM, single pallas_call.           #
# --------------------------------------------------------------------------- #
def _fused_kernel(x_ref, w_ref, b_ref, g_ref, bt_ref, o_ref, *, K, L, count, eps):
    """x_ref: (N, Cin, Lp+128) 'same'-padded input; w_ref: (Cout, Cin*K);
       b_ref/g_ref/bt_ref: (Cout, 1); o_ref: (N, Cout, Lp)."""
    Cout = w_ref.shape[0]
    Cin = x_ref.shape[1]
    Lp = o_ref.shape[2]

    x = x_ref[...].astype(jnp.float32)                         # (N, Cin, Lp+128)
    w = w_ref[...].astype(jnp.float32)                         # (Cout, Cin*K)
    b = b_ref[...].astype(jnp.float32)                         # (Cout, 1)

    # Conv1d('same') as K*Cin broadcast VPU MACs over the whole (N, Cout, Lp) slab.
    y = jnp.zeros(o_ref.shape, jnp.float32) + b[None]
    for k in range(K):                                         # static -> unrolled
        xk = x[:, :, k:k + Lp]                                 # hoisted: 1 shift / k
        for ci in range(Cin):
            wk = w[:, ci * K + k:ci * K + k + 1].reshape(1, Cout, 1)
            y = y + wk * xk[:, ci:ci + 1, :]

    # BatchNorm (training) statistics over valid positions only, centered
    # (two sweeps over the resident slab -> no E[x^2]-E[x]^2 cancellation).
    valid = (lax.broadcasted_iota(jnp.int32, (1, 1, Lp), 2) < L).astype(jnp.float32)
    inv_n = 1.0 / count
    mean = jnp.sum(jnp.sum(y * valid, axis=2, keepdims=True), axis=0) * inv_n  # (Cout,1)
    d = (y - mean[None]) * valid
    var = jnp.sum(jnp.sum(d * d, axis=2, keepdims=True), axis=0) * inv_n       # (Cout,1)
    scale = g_ref[...].astype(jnp.float32) * lax.rsqrt(var + eps)
    shift = bt_ref[...].astype(jnp.float32) - mean * scale

    o_ref[...] = jnp.maximum(y * scale[None] + shift[None], 0.0).astype(o_ref.dtype)


# --------------------------------------------------------------------------- #
# Tiled two-pass path (no intermediate y in HBM).                              #
# --------------------------------------------------------------------------- #
def _conv_tile(x_ref, xh_ref, w_ref, b_ref, K):
    """Conv1d('same') + bias for one (Bn, L-tile) -> (Bn, Cout, TL) f32.
       x_ref: (Bn, Cin, TL) main tile; xh_ref: (Bn, Cin, 128) right halo."""
    Bn, _Cin, TL = x_ref.shape
    Cout = w_ref.shape[0]
    xa = jnp.concatenate([x_ref[...], xh_ref[...]], axis=-1).astype(jnp.float32)
    w = w_ref[...].astype(jnp.float32)
    y = jnp.zeros((Bn, Cout, TL), jnp.float32) + b_ref[...].astype(jnp.float32)[None]
    for k in range(K):                                         # static -> unrolled
        xk = xa[:, :, k:k + TL]                                # hoisted: 1 shift / k
        for ci in range(_Cin):
            wk = w[:, ci * K + k:ci * K + k + 1].reshape(1, Cout, 1)
            y = y + wk * xk[:, ci:ci + 1, :]
    return y


def _stats_kernel(x_ref, xh_ref, w_ref, b_ref, ps_ref, acc_ref, *, K, L):
    """Pass 1: accumulate per-channel [sum, sum_sq] of conv+bias output over the
       'arbitrary' L axis in VMEM scratch; emit once per N-block."""
    l = pl.program_id(1)
    TL = x_ref.shape[2]

    @pl.when(l == 0)
    def _():
        acc_ref[...] = jnp.zeros_like(acc_ref)

    y = _conv_tile(x_ref, xh_ref, w_ref, b_ref, K)             # (Bn, Cout, TL)
    pos = lax.broadcasted_iota(jnp.int32, (1, 1, TL), 2) + l * TL
    ym = y * (pos < L).astype(jnp.float32)                     # mask padded tail
    s = jnp.sum(jnp.sum(ym, axis=2, keepdims=True), axis=0)     # (Cout, 1)
    ss = jnp.sum(jnp.sum(ym * y, axis=2, keepdims=True), axis=0)
    acc_ref[...] = acc_ref[...] + jnp.concatenate([s, ss], axis=1)

    @pl.when(l == pl.num_programs(1) - 1)
    def _():
        ps_ref[0] = acc_ref[...]


def _apply_kernel(x_ref, xh_ref, w_ref, b_ref, sc_ref, sh_ref, o_ref, *, K):
    """Pass 2: recompute conv, apply folded BN scale/shift, ReLU (lane-dense store)."""
    y = _conv_tile(x_ref, xh_ref, w_ref, b_ref, K)
    z = y * sc_ref[...][None] + sh_ref[...][None]
    o_ref[...] = jnp.maximum(z, 0.0).astype(o_ref.dtype)


# --------------------------------------------------------------------------- #
# Wrapper.                                                                     #
# --------------------------------------------------------------------------- #
def _pick_l_tile(Lp, max_tile):
    """Largest lane-dense (multiple-of-128) tile <= max_tile dividing Lp."""
    if Lp <= max_tile:
        return Lp
    t = (max_tile // 128) * 128
    while t > 128:
        if Lp % t == 0:
            return t
        t -= 128
    return 128


def _pick_batch_block(N):
    for bn in (8, 4, 2, 1):
        if N % bn == 0:
            return bn
    return 1


@functools.partial(jax.jit,
                   static_argnames=("kernel_size", "stride", "force_tiled", "max_tile"))
def conv_block_forward(x, weight, bias, gamma, beta, *,
                       kernel_size, stride, force_tiled=False, max_tile=2048):
    """x: (N, Cin, L) NCL (PyTorch layout). Returns (N, Cout, L)."""
    assert stride == 1, "padding='same' in PyTorch Conv1d requires stride=1"
    N, Cin, L = x.shape
    Cout = weight.shape[0]
    K = kernel_size
    assert 1 <= K - 0 and K - 1 <= 128, "halo wider than 128 lanes not supported"

    Lp = _round_up(L, 128)                  # lane-dense output width
    left = (K - 1) // 2                     # PyTorch 'same' split: left = total // 2

    w2 = weight.reshape(Cout, Cin * K)      # w2[o, ci*K + k]
    b2 = bias.reshape(Cout, 1)
    g2 = gamma.reshape(Cout, 1)
    bt2 = beta.reshape(Cout, 1)

    # ---------------- fused single-pass path (whole activation in VMEM) ---------
    fused_bytes = 4 * (N * Cin * (Lp + 128) + 2 * N * Cout * Lp)   # x + y + out, f32
    if (not force_tiled) and fused_bytes <= 12 * 1024 * 1024:      # v7x-safe budget
        Wx = Lp + 128
        x_pad = jnp.pad(x, ((0, 0), (0, 0), (left, Wx - L - left)))
        out = pl.pallas_call(
            functools.partial(_fused_kernel, K=K, L=L, count=float(N * L), eps=BN_EPS),
            out_shape=jax.ShapeDtypeStruct((N, Cout, Lp), x.dtype),
            compiler_params=pltpu.CompilerParams(vmem_limit_bytes=32 * 1024 * 1024),
        )(x_pad, w2, b2, g2, bt2)
        return out if Lp == L else out[:, :, :L]

    # ---------------- tiled two-pass path (no intermediate y in HBM) ------------
    TL = _pick_l_tile(Lp, max_tile)
    GL = Lp // TL
    tlb = TL // 128                         # halo block-index stride (128-lane units)
    Bn = _pick_batch_block(N)
    # keep the double-buffered per-step footprint modest (small-channel regime)
    while Bn > 1 and 4 * Bn * (Cin * (TL + 128) + 3 * Cout * TL) > 4 * 1024 * 1024:
        Bn //= 2
    NB = N // Bn

    Wx = Lp + TL                            # divisible by both TL and 128
    x_pad = jnp.pad(x, ((0, 0), (0, 0), (left, Wx - L - left)))

    in_isz = jnp.dtype(x.dtype).itemsize
    per_step = (Bn * Cin * (TL + 128) * in_isz       # x main + halo
                + Bn * Cout * TL * in_isz            # out tile
                + 4 * Bn * Cout * TL * 4)            # f32 in-kernel temporaries
    vmem_limit = int(min(32 * 1024 * 1024, max(8 * 1024 * 1024, 3 * per_step)))

    x_main_spec = pl.BlockSpec((Bn, Cin, TL), lambda n, l: (n, 0, l))
    x_halo_spec = pl.BlockSpec((Bn, Cin, 128), lambda n, l: (n, 0, (l + 1) * tlb))
    w_spec = pl.BlockSpec((Cout, Cin * K), lambda n, l: (0, 0))
    cvec_spec = pl.BlockSpec((Cout, 1), lambda n, l: (0, 0))

    # Pass 1: BN statistics only (accumulated across L in VMEM scratch).
    pstats = pl.pallas_call(
        functools.partial(_stats_kernel, K=K, L=L),
        grid=(NB, GL),
        in_specs=[x_main_spec, x_halo_spec, w_spec, cvec_spec],
        out_specs=pl.BlockSpec((1, Cout, 2), lambda n, l: (n, 0, 0)),
        out_shape=jax.ShapeDtypeStruct((NB, Cout, 2), jnp.float32),
        scratch_shapes=[pltpu.VMEM((Cout, 2), jnp.float32)],
        compiler_params=pltpu.CompilerParams(
            dimension_semantics=("parallel", "arbitrary"),
            vmem_limit_bytes=vmem_limit),
    )(x_pad, x_pad, w2, b2)

    # Fold batch stats + gamma/beta into per-channel scale/shift (one rsqrt/channel).
    # TODO(synk): E[x^2]-E[x]^2 can cancel for large-mean conv outputs; a Welford
    #             (count, mean, M2) tile combine would be more robust here.
    count = N * L
    mean = jnp.sum(pstats[:, :, 0], axis=0) / count                       # (Cout,)
    var = jnp.maximum(jnp.sum(pstats[:, :, 1], axis=0) / count - mean * mean, 0.0)
    scale = gamma.astype(jnp.float32) * lax.rsqrt(var + BN_EPS)
    shift = beta.astype(jnp.float32) - mean * scale

    # Pass 2: recompute conv, normalize, ReLU -> single lane-dense HBM write.
    out = pl.pallas_call(
        functools.partial(_apply_kernel, K=K),
        grid=(NB, GL),
        in_specs=[x_main_spec, x_halo_spec, w_spec, cvec_spec, cvec_spec, cvec_spec],
        out_specs=pl.BlockSpec((Bn, Cout, TL), lambda n, l: (n, 0, l)),
        out_shape=jax.ShapeDtypeStruct((N, Cout, Lp), x.dtype),
        compiler_params=pltpu.CompilerParams(
            dimension_semantics=("parallel", "parallel"),
            vmem_limit_bytes=vmem_limit),
    )(x_pad, x_pad, w2, b2, scale.reshape(Cout, 1), shift.reshape(Cout, 1))

    return out if Lp == L else out[:, :, :L]


# --------------------------------------------------------------------------- #
# Pure-JAX reference (mirrors PyTorch ConvBlock.forward, training-mode BN).    #
# --------------------------------------------------------------------------- #
def _reference(x, weight, bias, gamma, beta, *, kernel_size):
    total = kernel_size - 1
    left = total // 2
    y = lax.conv_general_dilated(
        x.astype(jnp.float32), weight.astype(jnp.float32),
        window_strides=(1,), padding=[(left, total - left)],
        dimension_numbers=("NCW", "OIW", "NCW"))
    y = y + bias.reshape(1, -1, 1)
    mean = jnp.mean(y, axis=(0, 2), keepdims=True)
    var = jnp.mean((y - mean) ** 2, axis=(0, 2), keepdims=True)
    y = (y - mean) * lax.rsqrt(var + BN_EPS)
    y = y * gamma.reshape(1, -1, 1) + beta.reshape(1, -1, 1)
    return jnp.maximum(y, 0.0)


def _make_inputs(key, N, Cin, Cout, L, K):
    kx, kw, kb, kg, kbt = jax.random.split(key, 5)
    x = jax.random.normal(kx, (N, Cin, L), dtype=jnp.float32)
    weight = jax.random.normal(kw, (Cout, Cin, K), dtype=jnp.float32) * 0.1
    bias = jax.random.normal(kb, (Cout,), dtype=jnp.float32) * 0.1
    gamma = 1.0 + 0.1 * jax.random.normal(kg, (Cout,), dtype=jnp.float32)
    beta = 0.1 * jax.random.normal(kbt, (Cout,), dtype=jnp.float32)
    return x, weight, bias, gamma, beta


if __name__ == "__main__":
    key = jax.random.PRNGKey(0)
    k1, k2 = jax.random.split(key)

    # ConvBlock(in_channels=4, out_channels=8, kernel_size=3, stride=1): demo shapes
    # -> fused single-pass VMEM-resident path.
    N, C_IN, C_OUT, L, K = 2, 4, 8, 16, 3
    x, wt, bs, gm, bt = _make_inputs(k1, N, C_IN, C_OUT, L, K)
    out = conv_block_forward(x, wt, bs, gm, bt, kernel_size=K, stride=1)
    out = jax.block_until_ready(out)
    ref = _reference(x, wt, bs, gm, bt, kernel_size=K)
    assert out.shape == (N, C_OUT, L), out.shape
    assert jnp.allclose(out, ref, atol=1e-4, rtol=1e-4), (
        float(jnp.max(jnp.abs(out - ref))))

    # Exercise the tiled two-pass path too (non-128 tail, wider kernel, halo cross).
    N2, L2, K2 = 2, 500, 5
    x2, wt2, bs2, gm2, bt2 = _make_inputs(k2, N2, C_IN, C_OUT, L2, K2)
    out2 = conv_block_forward(x2, wt2, bs2, gm2, bt2, kernel_size=K2, stride=1,
                              force_tiled=True, max_tile=256)
    out2 = jax.block_until_ready(out2)
    ref2 = _reference(x2, wt2, bs2, gm2, bt2, kernel_size=K2)
    assert out2.shape == (N2, C_OUT, L2), out2.shape
    assert jnp.allclose(out2, ref2, atol=1e-4, rtol=1e-4), (
        float(jnp.max(jnp.abs(out2 - ref2))))

    print("KERNEL_OK")
</pallas_src>

<mosaic_0001>
module attributes {stable_mosaic.version = 11 : i64} {
  func.func @_fused_kernel(%arg0: memref<2x4x256xf32, #tpu.memory_space<vmem>>, %arg1: memref<8x12xf32, #tpu.memory_space<vmem>>, %arg2: memref<8x1xf32, #tpu.memory_space<vmem>>, %arg3: memref<8x1xf32, #tpu.memory_space<vmem>>, %arg4: memref<8x1xf32, #tpu.memory_space<vmem>>, %arg5: memref<2x8x128xf32, #tpu.memory_space<vmem>>) attributes {dimension_semantics = [], scalar_prefetch = 0 : i64, scratch_operands = 0 : i64, tpu.core_type = #tpu.core_type<tc>} {
    %c0 = arith.constant 0 : index
    %c0_0 = arith.constant 0 : index
    %c0_1 = arith.constant 0 : index
    %0 = vector.load %arg0[%c0, %c0_0, %c0_1] : memref<2x4x256xf32, #tpu.memory_space<vmem>>, vector<2x4x256xf32>
    %c0_2 = arith.constant 0 : index
    %c0_3 = arith.constant 0 : index
    %1 = vector.load %arg1[%c0_2, %c0_3] : memref<8x12xf32, #tpu.memory_space<vmem>>, vector<8x12xf32>
    %c0_4 = arith.constant 0 : index
    %c0_5 = arith.constant 0 : index
    %2 = vector.load %arg2[%c0_4, %c0_5] : memref<8x1xf32, #tpu.memory_space<vmem>>, vector<8x1xf32>
    %cst = arith.constant 0.000000e+00 : f32
    %3 = vector.broadcast %cst : f32 to vector<2x8x128xf32>
    %4 = vector.shape_cast %2 : vector<8x1xf32> to vector<1x8x1xf32>
    %5 = vector.broadcast %4 : vector<1x8x1xf32> to vector<2x8x128xf32>
    %6 = arith.addf %3, %5 : vector<2x8x128xf32>
    %7 = vector.extract_strided_slice %0 {offsets = [0, 0, 0], sizes = [2, 4, 128], strides = [1, 1, 1]} : vector<2x4x256xf32> to vector<2x4x128xf32>
    %8 = vector.extract_strided_slice %1 {offsets = [0, 0], sizes = [8, 1], strides = [1, 1]} : vector<8x12xf32> to vector<8x1xf32>
    %9 = vector.shape_cast %8 : vector<8x1xf32> to vector<1x8x1xf32>
    %10 = vector.extract_strided_slice %7 {offsets = [0, 0, 0], sizes = [2, 1, 128], strides = [1, 1, 1]} : vector<2x4x128xf32> to vector<2x1x128xf32>
    %11 = vector.broadcast %9 : vector<1x8x1xf32> to vector<2x8x128xf32>
    %12 = vector.broadcast %10 : vector<2x1x128xf32> to vector<2x8x128xf32>
    %13 = arith.mulf %11, %12 : vector<2x8x128xf32>
    %14 = arith.addf %6, %13 : vector<2x8x128xf32>
    %15 = vector.extract_strided_slice %1 {offsets = [0, 3], sizes = [8, 1], strides = [1, 1]} : vector<8x12xf32> to vector<8x1xf32>
    %16 = vector.shape_cast %15 : vector<8x1xf32> to vector<1x8x1xf32>
    %17 = vector.extract_strided_slice %7 {offsets = [0, 1, 0], sizes = [2, 1, 128], strides = [1, 1, 1]} : vector<2x4x128xf32> to vector<2x1x128xf32>
    %18 = vector.broadcast %16 : vector<1x8x1xf32> to vector<2x8x128xf32>
    %19 = vector.broadcast %17 : vector<2x1x128xf32> to vector<2x8x128xf32>
    %20 = arith.mulf %18, %19 : vector<2x8x128xf32>
    %21 = arith.addf %14, %20 : vector<2x8x128xf32>
    %22 = vector.extract_strided_slice %1 {offsets = [0, 6], sizes = [8, 1], strides = [1, 1]} : vector<8x12xf32> to vector<8x1xf32>
    %23 = vector.shape_cast %22 : vector<8x1xf32> to vector<1x8x1xf32>
    %24 = vector.extract_strided_slice %7 {offsets = [0, 2, 0], sizes = [2, 1, 128], strides = [1, 1, 1]} : vector<2x4x128xf32> to vector<2x1x128xf32>
    %25 = vector.broadcast %23 : vector<1x8x1xf32> to vector<2x8x128xf32>
    %26 = vector.broadcast %24 : vector<2x1x128xf32> to vector<2x8x128xf32>
    %27 = arith.mulf %25, %26 : vector<2x8x128xf32>
    %28 = arith.addf %21, %27 : vector<2x8x128xf32>
    %29 = vector.extract_strided_slice %1 {offsets = [0, 9], sizes = [8, 1], strides = [1, 1]} : vector<8x12xf32> to vector<8x1xf32>
    %30 = vector.shape_cast %29 : vector<8x1xf32> to vector<1x8x1xf32>
    %31 = vector.extract_strided_slice %7 {offsets = [0, 3, 0], sizes = [2, 1, 128], strides = [1, 1, 1]} : vector<2x4x128xf32> to vector<2x1x128xf32>
    %32 = vector.broadcast %30 : vector<1x8x1xf32> to vector<2x8x128xf32>
    %33 = vector.broadcast %31 : vector<2x1x128xf32> to vector<2x8x128xf32>
    %34 = arith.mulf %32, %33 : vector<2x8x128xf32>
    %35 = arith.addf %28, %34 : vector<2x8x128xf32>
    %36 = vector.extract_strided_slice %0 {offsets = [0, 0, 1], sizes = [2, 4, 128], strides = [1, 1, 1]} : vector<2x4x256xf32> to vector<2x4x128xf32>
    %37 = vector.extract_strided_slice %1 {offsets = [0, 1], sizes = [8, 1], strides = [1, 1]} : vector<8x12xf32> to vector<8x1xf32>
    %38 = vector.shape_cast %37 : vector<8x1xf32> to vector<1x8x1xf32>
    %39 = vector.extract_strided_slice %36 {offsets = [0, 0, 0], sizes = [2, 1, 128], strides = [1, 1, 1]} : vector<2x4x128xf32> to vector<2x1x128xf32>
    %40 = vector.broadcast %38 : vector<1x8x1xf32> to vector<2x8x128xf32>
    %41 = vector.broadcast %39 : vector<2x1x128xf32> to vector<2x8x128xf32>
    %42 = arith.mulf %40, %41 : vector<2x8x128xf32>
    %43 = arith.addf %35, %42 : vector<2x8x128xf32>
    %44 = vector.extract_strided_slice %1 {offsets = [0, 4], sizes = [8, 1], strides = [1, 1]} : vector<8x12xf32> to vector<8x1xf32>
    %45 = vector.shape_cast %44 : vector<8x1xf32> to vector<1x8x1xf32>
    %46 = vector.extract_strided_slice %36 {offsets = [0, 1, 0], sizes = [2, 1, 128], strides = [1, 1, 1]} : vector<2x4x128xf32> to vector<2x1x128xf32>
    %47 = vector.broadcast %45 : vector<1x8x1xf32> to vector<2x8x128xf32>
    %48 = vector.broadcast %46 : vector<2x1x128xf32> to vector<2x8x128xf32>
    %49 = arith.mulf %47, %48 : vector<2x8x128xf32>
    %50 = arith.addf %43, %49 : vector<2x8x128xf32>
    %51 = vector.extract_strided_slice %1 {offsets = [0, 7], sizes = [8, 1], strides = [1, 1]} : vector<8x12xf32> to vector<8x1xf32>
    %52 = vector.shape_cast %51 : vector<8x1xf32> to vector<1x8x1xf32>
    %53 = vector.extract_strided_slice %36 {offsets = [0, 2, 0], sizes = [2, 1, 128], strides = [1, 1, 1]} : vector<2x4x128xf32> to vector<2x1x128xf32>
    %54 = vector.broadcast %52 : vector<1x8x1xf32> to vector<2x8x128xf32>
    %55 = vector.broadcast %53 : vector<2x1x128xf32> to vector<2x8x128xf32>
    %56 = arith.mulf %54, %55 : vector<2x8x128xf32>
    %57 = arith.addf %50, %56 : vector<2x8x128xf32>
    %58 = vector.extract_strided_slice %1 {offsets = [0, 10], sizes = [8, 1], strides = [1, 1]} : vector<8x12xf32> to vector<8x1xf32>
    %59 = vector.shape_cast %58 : vector<8x1xf32> to vector<1x8x1xf32>
    %60 = vector.extract_strided_slice %36 {offsets = [0, 3, 0], sizes = [2, 1, 128], strides = [1, 1, 1]} : vector<2x4x128xf32> to vector<2x1x128xf32>
    %61 = vector.broadcast %59 : vector<1x8x1xf32> to vector<2x8x128xf32>
    %62 = vector.broadcast %60 : vector<2x1x128xf32> to vector<2x8x128xf32>
    %63 = arith.mulf %61, %62 : vector<2x8x128xf32>
    %64 = arith.addf %57, %63 : vector<2x8x128xf32>
    %65 = vector.extract_strided_slice %0 {offsets = [0, 0, 2], sizes = [2, 4, 128], strides = [1, 1, 1]} : vector<2x4x256xf32> to vector<2x4x128xf32>
    %66 = vector.extract_strided_slice %1 {offsets = [0, 2], sizes = [8, 1], strides = [1, 1]} : vector<8x12xf32> to vector<8x1xf32>
    %67 = vector.shape_cast %66 : vector<8x1xf32> to vector<1x8x1xf32>
    %68 = vector.extract_strided_slice %65 {offsets = [0, 0, 0], sizes = [2, 1, 128], strides = [1, 1, 1]} : vector<2x4x128xf32> to vector<2x1x128xf32>
    %69 = vector.broadcast %67 : vector<1x8x1xf32> to vector<2x8x128xf32>
    %70 = vector.broadcast %68 : vector<2x1x128xf32> to vector<2x8x128xf32>
    %71 = arith.mulf %69, %70 : vector<2x8x128xf32>
    %72 = arith.addf %64, %71 : vector<2x8x128xf32>
    %73 = vector.extract_strided_slice %1 {offsets = [0, 5], sizes = [8, 1], strides = [1, 1]} : vector<8x12xf32> to vector<8x1xf32>
    %74 = vector.shape_cast %73 : vector<8x1xf32> to vector<1x8x1xf32>
    %75 = vector.extract_strided_slice %65 {offsets = [0, 1, 0], sizes = [2, 1, 128], strides = [1, 1, 1]} : vector<2x4x128xf32> to vector<2x1x128xf32>
    %76 = vector.broadcast %74 : vector<1x8x1xf32> to vector<2x8x128xf32>
    %77 = vector.broadcast %75 : vector<2x1x128xf32> to vector<2x8x128xf32>
    %78 = arith.mulf %76, %77 : vector<2x8x128xf32>
    %79 = arith.addf %72, %78 : vector<2x8x128xf32>
    %80 = vector.extract_strided_slice %1 {offsets = [0, 8], sizes = [8, 1], strides = [1, 1]} : vector<8x12xf32> to vector<8x1xf32>
    %81 = vector.shape_cast %80 : vector<8x1xf32> to vector<1x8x1xf32>
    %82 = vector.extract_strided_slice %65 {offsets = [0, 2, 0], sizes = [2, 1, 128], strides = [1, 1, 1]} : vector<2x4x128xf32> to vector<2x1x128xf32>
    %83 = vector.broadcast %81 : vector<1x8x1xf32> to vector<2x8x128xf32>
    %84 = vector.broadcast %82 : vector<2x1x128xf32> to vector<2x8x128xf32>
    %85 = arith.mulf %83, %84 : vector<2x8x128xf32>
    %86 = arith.addf %79, %85 : vector<2x8x128xf32>
    %87 = vector.extract_strided_slice %1 {offsets = [0, 11], sizes = [8, 1], strides = [1, 1]} : vector<8x12xf32> to vector<8x1xf32>
    %88 = vector.shape_cast %87 : vector<8x1xf32> to vector<1x8x1xf32>
    %89 = vector.extract_strided_slice %65 {offsets = [0, 3, 0], sizes = [2, 1, 128], strides = [1, 1, 1]} : vector<2x4x128xf32> to vector<2x1x128xf32>
    %90 = vector.broadcast %88 : vector<1x8x1xf32> to vector<2x8x128xf32>
    %91 = vector.broadcast %89 : vector<2x1x128xf32> to vector<2x8x128xf32>
    %92 = arith.mulf %90, %91 : vector<2x8x128xf32>
    %93 = arith.addf %86, %92 : vector<2x8x128xf32>
    %94 = tpu.iota {dimensions = array<i32: 2>} : vector<1x1x128xi32>
    %c16_i32 = arith.constant 16 : i32
    %95 = vector.broadcast %c16_i32 : i32 to vector<1x1x128xi32>
    %96 = arith.cmpi slt, %94, %95 : vector<1x1x128xi32>
    %97 = arith.extui %96 : vector<1x1x128xi1> to vector<1x1x128xi32>
    %98 = arith.sitofp %97 : vector<1x1x128xi32> to vector<1x1x128xf32>
    %99 = vector.broadcast %98 : vector<1x1x128xf32> to vector<2x8x128xf32>
    %100 = arith.mulf %93, %99 : vector<2x8x128xf32>
    %cst_6 = arith.constant dense<0.000000e+00> : vector<2x8xf32>
    %101 = vector.multi_reduction <add>, %100, %cst_6 [2] : vector<2x8x128xf32> to vector<2x8xf32>
    %102 = vector.shape_cast %101 : vector<2x8xf32> to vector<2x8x1xf32>
    %cst_7 = arith.constant dense<0.000000e+00> : vector<8x1xf32>
    %103 = vector.multi_reduction <add>, %102, %cst_7 [0] : vector<2x8x1xf32> to vector<8x1xf32>
    %cst_8 = arith.constant 3.125000e-02 : f32
    %104 = vector.broadcast %cst_8 : f32 to vector<8x1xf32>
    %105 = arith.mulf %103, %104 : vector<8x1xf32>
    %106 = vector.shape_cast %105 : vector<8x1xf32> to vector<1x8x1xf32>
    %107 = vector.broadcast %106 : vector<1x8x1xf32> to vector<2x8x128xf32>
    %108 = arith.subf %93, %107 : vector<2x8x128xf32>
    %109 = vector.broadcast %98 : vector<1x1x128xf32> to vector<2x8x128xf32>
    %110 = arith.mulf %108, %109 : vector<2x8x128xf32>
    %111 = arith.mulf %110, %110 : vector<2x8x128xf32>
    %cst_9 = arith.constant dense<0.000000e+00> : vector<2x8xf32>
    %112 = vector.multi_reduction <add>, %111, %cst_9 [2] : vector<2x8x128xf32> to vector<2x8xf32>
    %113 = vector.shape_cast %112 : vector<2x8xf32> to vector<2x8x1xf32>
    %cst_10 = arith.constant dense<0.000000e+00> : vector<8x1xf32>
    %114 = vector.multi_reduction <add>, %113, %cst_10 [0] : vector<2x8x1xf32> to vector<8x1xf32>
    %cst_11 = arith.constant 3.125000e-02 : f32
    %115 = vector.broadcast %cst_11 : f32 to vector<8x1xf32>
    %116 = arith.mulf %114, %115 : vector<8x1xf32>
    %c0_12 = arith.constant 0 : index
    %c0_13 = arith.constant 0 : index
    %117 = vector.load %arg3[%c0_12, %c0_13] : memref<8x1xf32, #tpu.memory_space<vmem>>, vector<8x1xf32>
    %cst_14 = arith.constant 9.99999974E-6 : f32
    %118 = vector.broadcast %cst_14 : f32 to vector<8x1xf32>
    %119 = arith.addf %116, %118 : vector<8x1xf32>
    %120 = math.rsqrt %119 : vector<8x1xf32>
    %121 = arith.mulf %117, %120 : vector<8x1xf32>
    %c0_15 = arith.constant 0 : index
    %c0_16 = arith.constant 0 : index
    %122 = vector.load %arg4[%c0_15, %c0_16] : memref<8x1xf32, #tpu.memory_space<vmem>>, vector<8x1xf32>
    %123 = arith.mulf %105, %121 : vector<8x1xf32>
    %124 = arith.subf %122, %123 : vector<8x1xf32>
    %125 = vector.shape_cast %121 : vector<8x1xf32> to vector<1x8x1xf32>
    %126 = vector.broadcast %125 : vector<1x8x1xf32> to vector<2x8x128xf32>
    %127 = arith.mulf %93, %126 : vector<2x8x128xf32>
    %128 = vector.shape_cast %124 : vector<8x1xf32> to vector<1x8x1xf32>
    %129 = vector.broadcast %128 : vector<1x8x1xf32> to vector<2x8x128xf32>
    %130 = arith.addf %127, %129 : vector<2x8x128xf32>
    %cst_17 = arith.constant 0.000000e+00 : f32
    %131 = vector.broadcast %cst_17 : f32 to vector<2x8x128xf32>
    %132 = arith.maximumf %130, %131 : vector<2x8x128xf32>
    %c0_18 = arith.constant 0 : index
    %c0_19 = arith.constant 0 : index
    %c0_20 = arith.constant 0 : index
    %133 = vector.load %arg5[%c0_18, %c0_19, %c0_20] : memref<2x8x128xf32, #tpu.memory_space<vmem>>, vector<2x8x128xf32>
    tpu.vector_store %arg5[%c0_18, %c0_19, %c0_20], %132 {strides = array<i32>} : memref<2x8x128xf32, #tpu.memory_space<vmem>>, vector<2x8x128xf32>,
    return
  }
}

</mosaic_0001>

<bundles_post_ra>
// kernel: conv_block_forward.1
= control target key start
LH: loop header
LB: loop body
LE: loop exit
PB: predicated region body
PF: predicated region fallthrough
CT: control target
= control target key end

     0   :  { %v577_v1 = vmov 1   ;;  %v578_v2 = vmov 7   ;;  %s771_s0 = inlined_call_operand.vmem [shape: f32[2,4,256], index: 0, kind: input, shape index: {}]   ;;  %s772_s1 = inlined_call_operand.vmem [shape: f32[8,12], index: 1, kind: input, shape index: {}]   ;;  %s773_s2 = inlined_call_operand.vmem [shape: f32[8,1], index: 2, kind: input, shape index: {}]   ;;  %s774_s3 = inlined_call_operand.vmem [shape: f32[8,1], index: 3, kind: input, shape index: {}]   ;;  %s775_s4 = inlined_call_operand.vmem [shape: f32[8,1], index: 4, kind: input, shape index: {}]   ;;  %s776_s5 = inlined_call_operand.hbm [shape: f32[2,8,128], index: 5, kind: output, shape index: {}]  }
   0x1   :  { %v23_v0 = vld [vmem:[%s772_s1] sm:$0xff]  ;;  %537 = vset.pattern.permute.xlu0 %v577_v1  ;;  %539 = vset.pattern.permute.xlu1 %v578_v2 }
   0x2   :  { %97 = vperm.xlu0 %537, %v23_v0   ;;  %224 = vperm.xlu1 %539, %v23_v0  }
   0x3   :  { %10 = vsyncpa [#allocation3], 0  ;;  %v579_v3 = vmov 4   ;;  %v580_v4 = vmov 10   ;;  %v581_v5 = vmov 2   ;;  %v582_v6 = vmov 5  }
   0x4   :  { %v583_v7 = vmov 8   ;;  %v584_v8 = vmov 6   ;;  %v585_v9 = vmov 11   ;;  %v586_v10 = vmov 0   ;;  %v24_v11 = vld [vmem:[%s773_s2] sm:$0xff]  ;;  %v22_v21 = vld [vmem:[%s771_s0 + $0x8] sm:$0xff] }
   0x5   :  { %v587_v12 = vmov 3   ;;  %v588_v13 = vmov 9   ;;  %v36_v14 = vlaneseq  ;;  %v21_v18 = vld [vmem:[%s771_s0] sm:$0xff]  ;;  %s589_s0 = smov 127   ;;  %s590_s24 = smov 126   ;;  %vm154_vm0 = vcmask 1039360  }
   0x6   :  { %538 = vset.pattern.permute.xlu0 %v579_v3  ;;  %540 = vset.pattern.permute.xlu1 %v580_v4  ;;  %vm367_vm1 = vcmask 1031168   ;;  %s592_s29 = smov [#allocation2]  }
   0x7   :  { %162 = vperm.xlu0 %538, %v23_v0   ;;  %286 = vperm.xlu1 %540, %v23_v0   ;;  %v632_v15 = vshrl.u32 %v36_v14, 7  ;;  %s507_s30 = sshll.u32 %s592_s29, 4  ;;  %s508_s30 = int_to_ptr.vmem [resolvable:$true] %s507_s30 }
   0x8   :  { %p558_p1 = scmp.lt.s32.totalorder %s508_s30, %s508_s30 }
   0x9   :  { %v38_v16 = vsub.s32 0, %v632_v15  ;;  %v108_v17 = vsub.s32 4, %v632_v15  ;;  %v54_v22 = vsub.s32 1, %v632_v15  ;;  %v171_v23 = vsub.s32 5, %v632_v15 }
   0xa   :  { %v70_v35 = vsub.s32 2, %v632_v15  ;;  %v233_v38 = vsub.s32 6, %v632_v15  ;;  %v295_v50 = vsub.s32 7, %v632_v15  ;;  %v86_v53 = vsub.s32 3, %v632_v15 }
   0xb   :  { %541 = vset.pattern.permute.xlu1 %v581_v5  ;;  %542 = vset.pattern.permute.xlu0 %v582_v6  ;;  %v109_v19 = vrot.slane %v21_v18, %v108_v17  ;;  %v639_v20 = vrot.slane %v21_v18, %v38_v16  ;;  %v117_v26 = vrot.slane %v22_v21, %v108_v17 }
   0xc   :  { %348 = vperm.xlu1 %541, %v23_v0   ;;  %375 = vperm.xlu0 %542, %v23_v0   ;;  %v651_v27 = vrot.slane %v22_v21, %v38_v16  ;;  %v172_v28 = vrot.slane %v21_v18, %v171_v23  ;;  %v653_v29 = vrot.slane %v21_v18, %v54_v22 }
   0xd   :  { %v646_v24 = vrot.slane %v109_v19, %v38_v16  ;;  %v649_v25 = vrot.slane %v639_v20, %v38_v16  ;;  %v657_v33 = vrot.slane %v117_v26, %v38_v16  ;;  %v180_v42 = vrot.slane %v22_v21, %v171_v23 }
   0xe   :  { %v660_v34 = vrot.slane %v651_v27, %v38_v16  ;;  %v665_v36 = vrot.slane %v172_v28, %v54_v22  ;;  %v668_v37 = vrot.slane %v653_v29, %v54_v22  ;;  %v673_v43 = vrot.slane %v22_v21, %v54_v22 }
   0xf   :  { %v675_v44 = vrot.slane %v21_v18, %v70_v35  ;;  %v234_v47 = vrot.slane %v21_v18, %v233_v38  ;;  %v200_v48 = vrot.slane %v180_v42, %v54_v22  ;;  %v242_v57 = vrot.slane %v22_v21, %v233_v38 }
  0x10   :  { %543 = vset.pattern.permute.xlu1 %v583_v7  ;;  %547 = vset.pattern.permute.xlu0 %v584_v8  ;;  %v196_v49 = vrot.slane %v673_v43, %v54_v22  ;;  %v687_v58 = vrot.slane %v22_v21, %v70_v35  ;;  %v296_v59 = vrot.slane %v21_v18, %v295_v50 }
  0x11   :  { %401 = vperm.xlu1 %543, %v23_v0   ;;  %65 = vperm.xlu0 %547, %v23_v0   ;;  %v254_v51 = vrot.slane %v234_v47, %v70_v35  ;;  %v250_v52 = vrot.slane %v675_v44, %v70_v35  ;;  %v691_v62 = vrot.slane %v21_v18, %v86_v53 }
  0x12   :  { %v262_v63 = vrot.slane %v242_v57, %v70_v35  ;;  %v316_v1 = vrot.slane %v296_v59, %v86_v53  ;;  %v304_v6 = vrot.slane %v22_v21, %v295_v50  ;;  %v697_v7 = vrot.slane %v22_v21, %v86_v53 }
  0x13   :  { %v312_v2 = vrot.slane %v691_v62, %v86_v53 }
  0x15   :  { %544 = vset.pattern.permute.xlu1 %v585_v9  ;;  %548 = vset.pattern.permute.xlu0 %v586_v10 }
  0x16   :  { %427 = vperm.xlu1 %544, %v23_v0   ;;  %33 = vperm.xlu0 %548, %v23_v0  }
  0x1a   :  { %545 = vset.pattern.permute.xlu1 %v586_v10 }
  0x1b   :  { %27 = vperm.xlu1 %545, %v24_v11   ;;  %v320_v11 = vrot.slane %v697_v7, %v86_v53 }
  0x1f   :  { %546 = vset.pattern.permute.xlu1 %v587_v12 }
  0x20   :  { %49 = vperm.xlu1 %546, %v23_v0  }
  0x24   :  { %549 = vset.pattern.permute.xlu1 %v588_v13 }
  0x25   :  { %81 = vperm.xlu1 %549, %v23_v0   ;;  %v258_v0 = vrot.slane %v687_v58, %v70_v35 }
  0x29   :  { %550 = vset.pattern.permute.xlu1 %v586_v10  ;;  %v324_v10 = vrot.slane %v304_v6, %v86_v53 }
  0x81   :  { %v98_v30 = vpop.permute.xlu0 %97  ;;  %v225_v54 = vpop.permute.xlu1 %224 }
  0x82   :  { %v139_v31 = vmul.f32 %v646_v24, %v98_v30  ;;  %v138_v32 = vmul.f32 %v649_v25, %v98_v30  ;;  %v141_v39 = vmul.f32 %v657_v33, %v98_v30  ;;  %v140_v40 = vmul.f32 %v660_v34, %v98_v30 }
  0x83   :  { %v264_v60 = vmul.f32 %v254_v51, %v225_v54  ;;  %v263_v61 = vmul.f32 %v250_v52, %v225_v54  ;;  %v266_v4 = vmul.f32 %v262_v63, %v225_v54  ;;  %v265_v5 = vmul.f32 %v258_v0, %v225_v54 }
  0x84   :  { %148 = vrot.lane.b32.xlu0 %v139_v31, %s589_s0  ;;  %146 = vrot.lane.b32.xlu1 %v138_v32, %s589_s0 }
  0x86   :  { %v163_v41 = vpop.permute.xlu0 %162  ;;  %v287_v3 = vpop.permute.xlu1 %286 }
  0x87   :  { %v202_v45 = vmul.f32 %v665_v36, %v163_v41  ;;  %v201_v46 = vmul.f32 %v668_v37, %v163_v41  ;;  %v204_v55 = vmul.f32 %v200_v48, %v163_v41  ;;  %v203_v56 = vmul.f32 %v196_v49, %v163_v41 }
  0x88   :  { %152 = vrot.lane.b32.xlu0 %v141_v39, %s589_s0  ;;  %150 = vrot.lane.b32.xlu1 %v140_v40, %s589_s0  ;;  %v326_v8 = vmul.f32 %v316_v1, %v287_v3  ;;  %v325_v9 = vmul.f32 %v312_v2, %v287_v3  ;;  %v328_v13 = vmul.f32 %v324_v10, %v287_v3 }
  0x89   :  { %v327_v15 = vmul.f32 %v320_v11, %v287_v3 }
  0x8b   :  { %v349_v12 = vpop.permute.xlu1 %348  ;;  %v376_v18 = vpop.permute.xlu0 %375 }
  0x8c   :  { %211 = vrot.lane.b32.xlu0 %v202_v45, %s589_s0  ;;  %209 = vrot.lane.b32.xlu1 %v201_v46, %s589_s0  ;;  %v352_v16 = vmul.f32 %v349_v12, %v646_v24  ;;  %v351_v17 = vmul.f32 %v349_v12, %v649_v25  ;;  %v354_v19 = vmul.f32 %v349_v12, %v657_v33 }
  0x8d   :  { %v353_v21 = vmul.f32 %v349_v12, %v660_v34  ;;  %v379_v22 = vmul.f32 %v376_v18, %v665_v36  ;;  %v378_v23 = vmul.f32 %v376_v18, %v668_v37  ;;  %v381_v25 = vmul.f32 %v376_v18, %v200_v48 }
  0x8e   :  { %v380_v26 = vmul.f32 %v376_v18, %v196_v49 }
  0x90   :  { %215 = vrot.lane.b32.xlu0 %v204_v55, %s589_s0  ;;  %213 = vrot.lane.b32.xlu1 %v203_v56, %s589_s0  ;;  %v402_v24 = vpop.permute.xlu1 %401  ;;  %v66_v39 = vpop.permute.xlu0 %65 }
  0x91   :  { %v405_v28 = vmul.f32 %v402_v24, %v254_v51  ;;  %v404_v30 = vmul.f32 %v402_v24, %v250_v52  ;;  %v407_v32 = vmul.f32 %v402_v24, %v262_v63  ;;  %v406_v33 = vmul.f32 %v402_v24, %v258_v0 }
  0x94   :  { %273 = vrot.lane.b32.xlu0 %v264_v60, %s589_s0  ;;  %271 = vrot.lane.b32.xlu1 %v263_v61, %s589_s0 }
  0x95   :  { %v428_v31 = vpop.permute.xlu1 %427  ;;  %v34_v41 = vpop.permute.xlu0 %33 }
  0x96   :  { %v431_v34 = vmul.f32 %v428_v31, %v316_v1  ;;  %v430_v35 = vmul.f32 %v428_v31, %v312_v2  ;;  %v433_v36 = vmul.f32 %v428_v31, %v324_v10  ;;  %v432_v37 = vmul.f32 %v428_v31, %v320_v11 }
  0x97   :  { %v44_v60 = vmul.f32 %v639_v20, %v34_v41  ;;  %v45_v0 = vmul.f32 %v651_v27, %v34_v41  ;;  %v77_v20 = vmul.f32 %v687_v58, %v66_v39 }
  0x98   :  { %277 = vrot.lane.b32.xlu0 %v266_v4, %s589_s0  ;;  %275 = vrot.lane.b32.xlu1 %v265_v5, %s589_s0  ;;  %v76_v5 = vmul.f32 %v675_v44, %v66_v39 }
  0x9a   :  { %v28_v38 = vpop.permute.xlu1 %27 }
  0x9b   :  { %v46_v1 = vadd.f32 %v44_v60, %v28_v38  ;;  %v47_v6 = vadd.f32 %v45_v0, %v28_v38 }
  0x9c   :  { %335 = vrot.lane.b32.xlu0 %v326_v8, %s589_s0  ;;  %333 = vrot.lane.b32.xlu1 %v325_v9, %s589_s0 }
  0x9f   :  { %v50_v40 = vpop.permute.xlu1 %49 }
  0xa0   :  { %339 = vrot.lane.b32.xlu0 %v328_v13, %s589_s0  ;;  %337 = vrot.lane.b32.xlu1 %v327_v15, %s589_s0  ;;  %v60_v2 = vmul.f32 %v653_v29, %v50_v40  ;;  %v61_v8 = vmul.f32 %v673_v43, %v50_v40 }
  0xa2   :  { %v62_v9 = vadd.f32 %v60_v2, %v46_v1  ;;  %v63_v12 = vadd.f32 %v61_v8, %v47_v6 }
  0xa4   :  { %361 = vrot.lane.b32.xlu0 %v352_v16, %s590_s24  ;;  %359 = vrot.lane.b32.xlu1 %v351_v17, %s590_s24  ;;  %v82_v42 = vpop.permute.xlu1 %81  ;;  %v78_v13 = vadd.f32 %v76_v5, %v62_v9  ;;  %v79_v17 = vadd.f32 %v77_v20, %v63_v12 }
  0xa5   :  { %v92_v27 = vmul.f32 %v691_v62, %v82_v42  ;;  %v93_v44 = vmul.f32 %v697_v7, %v82_v42 }
  0xa7   :  { %v94_v18 = vadd.f32 %v92_v27, %v78_v13  ;;  %v95_v24 = vadd.f32 %v93_v44, %v79_v17  ;;  %v477_v44 = vld [vmem:[%s774_s3] sm:$0xff]  ;;  %s553_s3 = scalar_lea.vmem %s508_s30, 256 }
  0xa8   :  { %365 = vrot.lane.b32.xlu0 %v354_v19, %s590_s24  ;;  %363 = vrot.lane.b32.xlu1 %v353_v21, %s590_s24  ;;  %p554_p0 = scmp.ne.s32.totalorder %s508_s30, %s553_s3  ;;  %p559_p2 = scmp.lt.s32.totalorder %s553_s3, %s553_s3 }
  0xaa   :  { %p560_p3 = por %p559_p2, %p558_p1 }
  0xac   :  { %388 = vrot.lane.b32.xlu0 %v379_v22, %s590_s24  ;;  %386 = vrot.lane.b32.xlu1 %v378_v23, %s590_s24  ;;  %p561_p4 = pnand %p560_p3, %p554_p0 }
  0xb0   :  { %392 = vrot.lane.b32.xlu0 %v381_v25, %s590_s24  ;;  %390 = vrot.lane.b32.xlu1 %v380_v26, %s590_s24 }
  0xb4   :  { %414 = vrot.lane.b32.xlu0 %v405_v28, %s590_s24  ;;  %412 = vrot.lane.b32.xlu1 %v404_v30, %s590_s24 }
  0xb8   :  { %418 = vrot.lane.b32.xlu0 %v407_v32, %s590_s24  ;;  %416 = vrot.lane.b32.xlu1 %v406_v33, %s590_s24 }
  0xbc   :  { %440 = vrot.lane.b32.xlu0 %v431_v34, %s590_s24  ;;  %438 = vrot.lane.b32.xlu1 %v430_v35, %s590_s24 }
  0xc0   :  { %444 = vrot.lane.b32.xlu0 %v433_v36, %s590_s24  ;;  %442 = vrot.lane.b32.xlu1 %v432_v37, %s590_s24  ;;  %v453_v36 = vand.u32 127, %v36_v14 }
  0xc2   :  { %vm454_vm2 = vcmp.lt.s32.totalorder %v453_v36, 16 }
  0xf6   :  { %v149_v45 = vpop.permute.xlu0 %148  ;;  %v147_v46 = vpop.permute.xlu1 %146 }
  0xf7   :  { %v155_v29 = vsel %vm154_vm0, %v147_v46, %v149_v45 }
  0xf8   :  { %v159_v19 = vadd.f32 %v155_v29, %v94_v18 }
  0xfa   :  { %v153_v47 = vpop.permute.xlu0 %152  ;;  %v151_v48 = vpop.permute.xlu1 %150 }
  0xfb   :  { %v156_v23 = vsel %vm154_vm0, %v151_v48, %v153_v47 }
  0xfc   :  { %v160_v28 = vadd.f32 %v156_v23, %v95_v24 }
  0xfe   :  { %v212_v49 = vpop.permute.xlu0 %211  ;;  %v210_v50 = vpop.permute.xlu1 %209 }
  0xff   :  { %v217_v43 = vsel %vm154_vm0, %v210_v50, %v212_v49 }
 0x100   :  { %v221_v25 = vadd.f32 %v217_v43, %v159_v19  ;;  %v481_v19 = vld [vmem:[%s775_s4] sm:$0xff] }
 0x102   :  { %v216_v51 = vpop.permute.xlu0 %215  ;;  %v214_v52 = vpop.permute.xlu1 %213 }
 0x103   :  { %v218_v62 = vsel %vm154_vm0, %v214_v52, %v216_v51 }
 0x104   :  { %v222_v34 = vadd.f32 %v218_v62, %v160_v28 }
 0x106   :  { %v274_v53 = vpop.permute.xlu0 %273  ;;  %v272_v54 = vpop.permute.xlu1 %271 }
 0x107   :  { %v279_v58 = vsel %vm154_vm0, %v272_v54, %v274_v53 }
 0x108   :  { %v283_v30 = vadd.f32 %v279_v58, %v221_v25 }
 0x10a   :  { %v278_v55 = vpop.permute.xlu0 %277  ;;  %v276_v56 = vpop.permute.xlu1 %275 }
 0x10b   :  { %v280_v32 = vsel %vm154_vm0, %v276_v56, %v278_v55  ;;  %v591_v55 = vmov 0.0  }
 0x10c   :  { %v284_v39 = vadd.f32 %v280_v32, %v222_v34  ;;  %v518_v56 = vsel %vm454_vm2, 1.0, %v591_v55 }
 0x10e   :  { %v336_v57 = vpop.permute.xlu0 %335  ;;  %v334_v59 = vpop.permute.xlu1 %333 }
 0x10f   :  { %v341_v26 = vsel %vm154_vm0, %v334_v59, %v336_v57 }
 0x110   :  { %v345_v35 = vadd.f32 %v341_v26, %v283_v30 }
 0x112   :  { %v340_v61 = vpop.permute.xlu0 %339  ;;  %v338_v63 = vpop.permute.xlu1 %337 }
 0x113   :  { %v342_v37 = vsel %vm154_vm0, %v338_v63, %v340_v61 }
 0x114   :  { %v346_v47 = vadd.f32 %v342_v37, %v284_v39 }
 0x116   :  { %v362_v3 = vpop.permute.xlu0 %361  ;;  %v360_v4 = vpop.permute.xlu1 %359 }
 0x117   :  { %v368_v33 = vsel %vm367_vm1, %v360_v4, %v362_v3 }
 0x118   :  { %v372_v40 = vadd.f32 %v368_v33, %v345_v35 }
 0x11a   :  { %v366_v10 = vpop.permute.xlu0 %365  ;;  %v364_v11 = vpop.permute.xlu1 %363 }
 0x11b   :  { %v369_v45 = vsel %vm367_vm1, %v364_v11, %v366_v10 }
 0x11c   :  { %v373_v50 = vadd.f32 %v369_v45, %v346_v47 }
 0x11e   :  { %v389_v15 = vpop.permute.xlu0 %388  ;;  %v387_v16 = vpop.permute.xlu1 %386 }
 0x11f   :  { %v394_v38 = vsel %vm367_vm1, %v387_v16, %v389_v15 }
 0x120   :  { %v398_v48 = vadd.f32 %v394_v38, %v372_v40 }
 0x122   :  { %v393_v21 = vpop.permute.xlu0 %392  ;;  %v391_v22 = vpop.permute.xlu1 %390 }
 0x123   :  { %v395_v49 = vsel %vm367_vm1, %v391_v22, %v393_v21 }
 0x124   :  { %v399_v57 = vadd.f32 %v395_v49, %v373_v50 }
 0x126   :  { %v415_v7 = vpop.permute.xlu0 %414  ;;  %v413_v31 = vpop.permute.xlu1 %412 }
 0x127   :  { %v420_v46 = vsel %vm367_vm1, %v413_v31, %v415_v7 }
 0x128   :  { %v424_v51 = vadd.f32 %v420_v46, %v398_v48 }
 0x12a   :  { %v419_v41 = vpop.permute.xlu0 %418  ;;  %v417_v42 = vpop.permute.xlu1 %416 }
 0x12b   :  { %v421_v53 = vsel %vm367_vm1, %v417_v42, %v419_v41 }
 0x12c   :  { %v425_v60 = vadd.f32 %v421_v53, %v399_v57 }
 0x12e   :  { %v441_v14 = vpop.permute.xlu0 %440  ;;  %v439_v52 = vpop.permute.xlu1 %438 }
 0x12f   :  { %v446_v54 = vsel %vm367_vm1, %v439_v52, %v441_v14 }
 0x130   :  { %v450_v59 = vadd.f32 %v446_v54, %v424_v51 }
 0x132   :  { %v445_v61 = vpop.permute.xlu0 %444  ;;  %v443_v63 = vpop.permute.xlu1 %442  ;;  %v457_v0 = vmul.f32 %v518_v56, %v450_v59 }
 0x133   :  { %v447_v1 = vsel %vm367_vm1, %v443_v63, %v445_v61 }
 0x134   :  { %v451_v2 = vadd.f32 %v447_v1, %v425_v60  ;;  %459 = vadd.xlane.f32.xlu1 %v457_v0 }
 0x136   :  { %v458_v3 = vmul.f32 %v518_v56, %v451_v2 }
 0x138   :  { %461 = vadd.xlane.f32.xlu0 %v458_v3 }
 0x1c1   :  { %v460_v4 = vpop.xlane.xlu1 %459 }
 0x1c5   :  { %v462_v5 = vpop.xlane.xlu0 %461 }
 0x1c6   :  { %v463_v6 = vadd.f32 %v462_v5, %v460_v4 }
 0x1c8   :  { %v464_v8 = vmul.f32 0.03125, %v463_v6 }
 0x1ca   :  { %v466_v9 = vsub.f32 %v451_v2, %v464_v8  ;;  %v465_v10 = vsub.f32 %v450_v59, %v464_v8 }
 0x1cc   :  { %v468_v11 = vmul.f32 %v518_v56, %v466_v9  ;;  %v467_v20 = vmul.f32 %v518_v56, %v465_v10 }
 0x1ce   :  { %v470_v12 = vmul.f32 %v468_v11, %v468_v11  ;;  %v469_v13 = vmul.f32 %v467_v20, %v467_v20 }
 0x1d0   :  { %473 = vadd.xlane.f32.xlu1 %v470_v12  ;;  %471 = vadd.xlane.f32.xlu0 %v469_v13 }
 0x25d   :  { %v474_v27 = vpop.xlane.xlu1 %473  ;;  %v472_v15 = vpop.xlane.xlu0 %471 }
 0x25e   :  { %v475_v16 = vadd.f32 %v474_v27, %v472_v15 }
 0x260   :  { %v476_v29 = vmul.f32 0.03125, %v475_v16 }
 0x262   :  { %v478_v17 = vadd.f32 1e-05, %v476_v29 }
 0x264   :  { %551 = vrsqrt.f32 %v478_v17 }
 0x26e   :  { %v552_v18 = vpop.eup %551 }
 0x26f   :  { %v480_v43 = vmul.f32 %v552_v18, %v477_v44 }
 0x271   :  { %486 = vperm.xlu0 %548, %v480_v43   ;;  %v482_v21 = vmul.f32 %v480_v43, %v464_v8 }
 0x273   :  { %v483_v22 = vsub.f32 %v481_v19, %v482_v21 }
 0x275   :  { %493 = vperm.xlu1 %550, %v483_v22  }
 0x2f0   :  { %v487_v23 = vpop.permute.xlu0 %486 }
 0x2f1   :  { %v489_v58 = vmul.f32 %v487_v23, %v450_v59  ;;  %v490_v24 = vmul.f32 %v487_v23, %v451_v2 }
 0x2f4   :  { %v494_v25 = vpop.permute.xlu1 %493 }
 0x2f5   :  { %v496_v62 = vadd.f32 %v494_v25, %v489_v58  ;;  %v497_v26 = vadd.f32 %v494_v25, %v490_v24 }
 0x2f7   :  { %v498_v28 = vmax.f32 %v496_v62, 0.0  ;;  %v499_v30 = vmax.f32 %v497_v26, 0.0 }
 0x2f9   :  { %500 = vst [vmem:[#allocation2] sm:$0xff] %v498_v28  ;;  %501 = vst [vmem:[#allocation2 + $0x8] sm:$0xff] %v499_v30 }
 0x2fa   :  { %564 = shalt.err (!%p561_p4)
}
 0x2fb   :  { %s565_s7 = scalar_lea.hbm %s776_s5, 256 }
 0x2fc   :  { %p566_p5 = scmp.ne.s32.totalorder %s776_s5, %s565_s7  ;;  %p569_p6 = scmp.lt.u32.totalorder %s565_s7, %s776_s5 }
 0x2fe   :  { %p571_p7 = pnand %p569_p6, %p566_p5 }
 0x300   :  { %574 = shalt.err (!%p571_p7)
}
 0x301   :  { %s593_s12 = smov 128   ;;  %s594_s13 = smov 8  }
 0x302   :  { %513 = dma.vmem_to_hbm [thread:$0]  %s508_s30, 256, %s776_s5, [#allocation3], %s593_s12, %s593_s12, %s594_s13  }
 0x303   :  { %575 = dma.done.wait [#allocation3], 256  }
 0x304   :  { %576 = vsyncadd [#allocation3], 4294967040 }
 0x305   :  { %517 = vsyncpa [#allocation3], 1 }

</bundles_post_ra>
